<compile_context>
chip_gen: v7x
topology: tpu7x:2x2x1
jax: 0.10.0
libtpu: 0.0.40
codegen_flags: <defaults>
</compile_context>

<pallas_src>
import functools

import jax
import jax.numpy as jnp
from jax.experimental import pallas as pl
from jax.experimental.pallas import tpu as pltpu

# Above the 16/32 MiB scoped defaults, below v7x's 64 MiB physical VMEM.
_VMEM_LIMIT_BYTES = 48 * 1024 * 1024


# ---------------------------------------------------------------------------
# Phase 1: nx2[e, h] = natt_h^2 * ||x_{e,h}||^2, tiled over edges.
# ---------------------------------------------------------------------------
def _sqnorm_kernel(x_ref, sel_ref, natt_sq_ref, out_ref):
    # x_ref:       [be, H*D] lane-dense feature slab (any float dtype)
    # sel_ref:     [H*D, H]  0/1 block-diagonal head selector (f32)
    # natt_sq_ref: [1, H]    per-head (att_norm * ||att||)^2 (f32)
    # out_ref:     [be, H]   f32
    x = x_ref[...].astype(jnp.float32)
    x2 = x * x
    # Exact-in-f32 per-head sum of squares on the (idle) MXU: split x2 into a
    # bf16-representable hi part + f32 residual so the result is accurate to
    # ~2^-17 relative even if the hardware matmul rounds operands to bf16
    # (sel is 0/1, hence exactly representable).
    hi = x2.astype(jnp.bfloat16).astype(jnp.float32)
    lo = x2 - hi
    sel = sel_ref[...]
    nx = (jnp.dot(hi, sel, preferred_element_type=jnp.float32)
          + jnp.dot(lo, sel, preferred_element_type=jnp.float32))
    out_ref[...] = nx * natt_sq_ref[...]          # [1, H] broadcasts over rows


# ---------------------------------------------------------------------------
# Phase 2: alpha / (sqrt(gmax + nx2) + eps), flat lane-dense elementwise.
# (natt^2 was folded into nx2/gmax, so no per-head constant is needed here.)
# ---------------------------------------------------------------------------
def _scale_kernel(nx_ref, gmax_ref, alpha_ref, out_ref, *, eps):
    denom = jnp.sqrt(gmax_ref[...] + nx_ref[...]) + eps
    inv = pl.reciprocal(denom)                    # exact; lowers via the EUP
    out_ref[...] = (alpha_ref[...].astype(jnp.float32) * inv).astype(
        out_ref.dtype)


def lipschitz_norm(x, att, alpha, index, *, num_nodes, att_norm=4, eps=1e-12,
                   block_e=8192, block_flat=65536):
    """Pallas implementation of LipschitzNorm.forward (recenter=False).

    x:     [E, H, D] per-edge features
    att:   (att_l, att_r), each [1, H, D]
    alpha: [E, H, 1] attention scores
    index: [E] int32 destination-node id of each edge
    """
    att_l, att_r = att
    E, H, D = x.shape
    HD = H * D
    L = E * H

    cparams = pltpu.CompilerParams(
        dimension_semantics=("parallel",),
        vmem_limit_bytes=_VMEM_LIMIT_BYTES)

    # Per-head (att_norm * ||cat(att_l, att_r)||)^2 -- tiny, computed in XLA.
    natt_sq = (float(att_norm) ** 2) * (
        jnp.sum(att_l.reshape(H, D).astype(jnp.float32) ** 2, axis=-1)
        + jnp.sum(att_r.reshape(H, D).astype(jnp.float32) ** 2, axis=-1))
    natt_sq = natt_sq.reshape(1, H)

    # 0/1 block-diagonal head selector (exactly bf16-representable on purpose).
    sel = ((jnp.arange(HD, dtype=jnp.int32)[:, None] // D)
           == jnp.arange(H, dtype=jnp.int32)[None, :]).astype(jnp.float32)

    # ---- phase 1: ragged-tiled over edges, lane-dense [E, H*D] input --------
    x2d = x.reshape(E, HD)                        # free contiguous reshape
    be = min(int(block_e), E)
    if be < E:
        be = max(8, (be // 8) * 8)                # sublane-aligned when tiling
    grid1 = (pl.cdiv(E, be),)

    nx2 = pl.pallas_call(
        _sqnorm_kernel,
        out_shape=jax.ShapeDtypeStruct((E, H), jnp.float32),
        grid=grid1,
        in_specs=[pl.BlockSpec((be, HD), lambda i: (i, 0)),
                  pl.BlockSpec((HD, H), lambda i: (0, 0)),
                  pl.BlockSpec((1, H), lambda i: (0, 0))],
        out_specs=pl.BlockSpec((be, H), lambda i: (i, 0)),
        compiler_params=cparams,
    )(x2d, sel, natt_sq)

    # ---- per-node scatter-max + gather back to edges (data-dependent,
    #      cross-tile -> left to XLA; touches only [E, H]-sized arrays) -------
    idx = index.astype(jnp.int32)
    seg_max = jax.ops.segment_max(nx2, idx, num_segments=int(num_nodes))  # [N,H]
    gmax = jnp.take(seg_max, idx, axis=0)                                 # [E,H]

    # ---- phase 2: wide lane-dense flat blocks, own grid ---------------------
    bl = min(int(block_flat), L)
    if bl < L:
        bl = max(128, (bl // 128) * 128)          # lane-aligned when tiling
    grid2 = (pl.cdiv(L, bl),)
    flat_spec = pl.BlockSpec((1, bl), lambda i: (0, i))

    out_flat = pl.pallas_call(
        functools.partial(_scale_kernel, eps=float(eps)),
        out_shape=jax.ShapeDtypeStruct((1, L), alpha.dtype),
        grid=grid2,
        in_specs=[flat_spec, flat_spec, flat_spec],
        out_specs=flat_spec,
        compiler_params=cparams,
    )(nx2.reshape(1, L), gmax.reshape(1, L), alpha.reshape(1, L))

    return out_flat.reshape(E, H, 1)


def _reference(x, att, alpha, index, num_nodes, att_norm=4, eps=1e-12):
    """Pure-JAX reference matching the PyTorch forward (recenter=False)."""
    att_l, att_r = att
    norm_x = jnp.sum(x * x, axis=-1, keepdims=True)                 # [E, H, 1]
    seg_max = jax.ops.segment_max(norm_x, index,
                                  num_segments=num_nodes)           # [N, H, 1]
    max_norm = jnp.sqrt(seg_max[index] + norm_x)                    # [E, H, 1]
    cat = jnp.concatenate((att_l, att_r), axis=-1)                  # [1, H, 2D]
    norm_att = att_norm * jnp.linalg.norm(cat, axis=-1, keepdims=True)
    return alpha / (norm_att * max_norm + eps)


if __name__ == "__main__":
    key = jax.random.PRNGKey(0)
    # E deliberately not a multiple of the block so the ragged-last-tile,
    # multi-step grid path is exercised in both phases at this tiny size.
    E, H, D, N = 260, 4, 32, 16

    k1, k2, k3, k4, k5 = jax.random.split(key, 5)
    x = jax.random.normal(k1, (E, H, D), dtype=jnp.float32)
    att_l = jax.random.normal(k2, (1, H, D), dtype=jnp.float32)
    att_r = jax.random.normal(k3, (1, H, D), dtype=jnp.float32)
    alpha = jax.random.uniform(k4, (E, H, 1), dtype=jnp.float32)
    index = jax.random.randint(k5, (E,), 0, N, dtype=jnp.int32)

    out = lipschitz_norm(x, (att_l, att_r), alpha, index, num_nodes=N,
                         block_e=128, block_flat=512)
    out = jax.block_until_ready(out)

    ref = _reference(x, (att_l, att_r), alpha, index, N)
    assert out.shape == (E, H, 1)
    err = float(jnp.max(jnp.abs(out - ref)))
    # Tolerance covers MXU split-accumulation + rsqrt/reciprocal rounding.
    assert jnp.allclose(out, ref, rtol=1e-4, atol=1e-6), f"max abs err = {err}"

    print("KERNEL_OK")
</pallas_src>

<mosaic_0001>
module attributes {stable_mosaic.version = 11 : i64} {
  func.func @_sqnorm_kernel(%arg0: i32, %arg1: memref<128x128xf32, #tpu.memory_space<vmem>>, %arg2: memref<128x4xf32, #tpu.memory_space<vmem>>, %arg3: memref<1x4xf32, #tpu.memory_space<vmem>>, %arg4: memref<128x4xf32, #tpu.memory_space<vmem>>) attributes {dimension_semantics = [#tpu.dimension_semantics<parallel>], iteration_bounds = array<i64: 3>, scalar_prefetch = 0 : i64, scratch_operands = 0 : i64, tpu.core_type = #tpu.core_type<tc>, window_params = [{transform_indices = @transform_0, window_bounds = array<i64: 128, 128>}, {pipeline_mode = #tpu.pipeline_mode<synchronous>, transform_indices = @transform_1, window_bounds = array<i64: 128, 4>}, {pipeline_mode = #tpu.pipeline_mode<synchronous>, transform_indices = @transform_2, window_bounds = array<i64: 1, 4>}, {transform_indices = @transform_3, window_bounds = array<i64: 128, 4>}]} {
    %c0 = arith.constant 0 : index
    %c0_0 = arith.constant 0 : index
    %0 = vector.load %arg1[%c0, %c0_0] : memref<128x128xf32, #tpu.memory_space<vmem>>, vector<128x128xf32>
    %1 = arith.mulf %0, %0 : vector<128x128xf32>
    %2 = arith.truncf %1 : vector<128x128xf32> to vector<128x128xbf16>
    %3 = arith.extf %2 : vector<128x128xbf16> to vector<128x128xf32>
    %4 = arith.subf %1, %3 : vector<128x128xf32>
    %c0_1 = arith.constant 0 : index
    %c0_2 = arith.constant 0 : index
    %5 = vector.load %arg2[%c0_1, %c0_2] : memref<128x4xf32, #tpu.memory_space<vmem>>, vector<128x4xf32>
    %cst = arith.constant dense<0.000000e+00> : vector<128x4xf32>
    %6 = tpu.matmul %3, %5, %cst {dimension_numbers = #tpu.dot_dimension_numbers<[1], [0], [0], [1], [0, 0, 1, 1], [], []>} : vector<128x128xf32>, vector<128x4xf32>, vector<128x4xf32> -> vector<128x4xf32>
    %cst_3 = arith.constant dense<0.000000e+00> : vector<128x4xf32>
    %7 = tpu.matmul %4, %5, %cst_3 {dimension_numbers = #tpu.dot_dimension_numbers<[1], [0], [0], [1], [0, 0, 1, 1], [], []>} : vector<128x128xf32>, vector<128x4xf32>, vector<128x4xf32> -> vector<128x4xf32>
    %8 = arith.addf %6, %7 : vector<128x4xf32>
    %c0_4 = arith.constant 0 : index
    %c0_5 = arith.constant 0 : index
    %9 = vector.load %arg3[%c0_4, %c0_5] : memref<1x4xf32, #tpu.memory_space<vmem>>, vector<1x4xf32>
    %10 = vector.broadcast %9 : vector<1x4xf32> to vector<128x4xf32>
    %11 = arith.mulf %8, %10 : vector<128x4xf32>
    %c0_6 = arith.constant 0 : index
    %c0_7 = arith.constant 0 : index
    %12 = vector.load %arg4[%c0_6, %c0_7] : memref<128x4xf32, #tpu.memory_space<vmem>>, vector<128x4xf32>
    tpu.vector_store %arg4[%c0_6, %c0_7], %11 {strides = array<i32>} : memref<128x4xf32, #tpu.memory_space<vmem>>, vector<128x4xf32>,
    return
  }
  func.func @transform_0(%arg0: i32) -> (i32, i32) {
    %c0_i32 = arith.constant 0 : i32
    %c0_i32_0 = arith.constant 0 : i32
    return %arg0, %c0_i32 : i32, i32
  }
  func.func @transform_1(%arg0: i32) -> (i32, i32) {
    %c0_i32 = arith.constant 0 : i32
    %c0_i32_0 = arith.constant 0 : i32
    %c0_i32_1 = arith.constant 0 : i32
    return %c0_i32, %c0_i32_0 : i32, i32
  }
  func.func @transform_2(%arg0: i32) -> (i32, i32) {
    %c0_i32 = arith.constant 0 : i32
    %c0_i32_0 = arith.constant 0 : i32
    %c0_i32_1 = arith.constant 0 : i32
    return %c0_i32, %c0_i32_0 : i32, i32
  }
  func.func @transform_3(%arg0: i32) -> (i32, i32) {
    %c0_i32 = arith.constant 0 : i32
    %c0_i32_0 = arith.constant 0 : i32
    return %arg0, %c0_i32 : i32, i32
  }
}

</mosaic_0001>

<bundles_post_ra>
// kernel: tpu_custom_call.1
= control target key start
LH: loop header
LB: loop body
LE: loop exit
PB: predicated region body
PF: predicated region fallthrough
CT: control target
= control target key end

     0   :  { %8 = vsyncpa [#allocation3], 0  ;;  %s1772_s0 = inlined_call_operand.hbm [shape: f32[260,128], index: 0, kind: input, shape index: {}]   ;;  %s1773_s1 = inlined_call_operand.vmem [shape: f32[128,4], index: 1, kind: input, shape index: {}]   ;;  %s1774_s2 = inlined_call_operand.vmem [shape: f32[1,4], index: 2, kind: input, shape index: {}]   ;;  %s1775_s3 = inlined_call_operand.vmem [shape: f32[260,4], index: 3, kind: output, shape index: {}]  }
   0x1   :  { %10 = vsyncpa [#allocation3 + $0x1], 0  ;;  %s1446_s12 = smov 0   ;;  %s1448_s13 = smov 0  }
   0x2   :  { %s1450_s14 = smov 0   ;;  %s1452_s15 = smov 0  }
   0x3 LB: > { %s1465_s16 = sadd.s32 4294967295, %s1389_s15   ;;  %s1468_s17 = sadd.s32 1, %s1389_s15   ;;  %s1389_s15 = sphi %s1452_s15, %s1784_s15   ;;  %s1385_s14 = sphi %s1450_s14, %s1783_s14   ;;  %s1381_s13 = sphi %s1448_s13, %s1782_s13   ;;  %s1377_s12 = sphi %s1446_s12, %s1781_s12  }
   0x4   : > { %s20_s18 = ssub.s32 %s1389_s15, %s1468_s17  ;;  %s23_s19 = sadd.s32 1, %s1385_s14 }
   0x5   : > { %p21_p0 = scmp.eq.s32.totalorder %s20_s18, 0  ;;  %p30_p1 = scmp.ne.s32.totalorder %s1385_s14, %s1381_s13 }
   0x6   : > { %p31_p2 = scmp.eq.s32.totalorder %s1389_s15, 0  ;;  %p36_p3 = scmp.ne.s32.totalorder %s1381_s13, %s1377_s12 }
   0x7   : > { %s1478_s20 = scalar_select %p21_p0, %s1385_s14, %s23_s19  }
   0x8   : > { %p32_p4 = por %p31_p2, %p30_p1  ;;  %p37_p5 = scmp.eq.s32.totalorder %s1465_s16, 0 }
   0x9   : > { %p102_p6 = scmp.eq.s32.totalorder %s1465_s16, 2  ;;  %p907_p9 = scmp.ge.s32.totalorder %s1389_s15, 3 }
   0xa   : > { %p1482_p7 = por %p37_p5, %p36_p3 }
   0xb   : > { %p1486_p8 = por %p102_p6, %p30_p1  ;;  %130 = sbr.rel (%p907_p9) target bundleno = 53 (0x35), region = 24 }
  0x12   : > { %133 = sbr.rel (!%p32_p4) target bundleno = 53 (0x35), region = 28  ;;  %s134_s23 = sand.u32 (%p32_p4), 1, %s1385_s14  }
  0x13   : > { %s909_s24 = sshll.u32 (%p32_p4), %s1389_s15, 4  ;;  %s908_s25 = sshll.u32 (%p32_p4), %s134_s23, 7 }
  0x14   : > { %s140_s26 = ssub.s32 (%p32_p4), 33, %s909_s24  ;;  %s1496_s29 = scalar_lea.sflag (%p32_p4), [#allocation3], %s134_s23 }
  0x15   : > { %p141_p10 = scmp.lt.s32.totalorder (%p32_p4), %s140_s26, 16  ;;  %s138_s30 = scalar_lea.vmem (%p32_p4), [#allocation2], %s908_s25 }
  0x19   : > { %s1786_s26 = smov (!%p141_p10, %s140_s26), 16 }
  0x1a   : > { %s1493_s27 = sshll.u32 %s1786_s26, 7 }
  0x1b   : > { %s145_s28 = ssub.s32 2048, %s1493_s27 }
  0x1c   : > { %146 = vsyncadd %s1496_s29, %s145_s28  ;;  %p911_p11 = scmp.ne.s32.totalorder %s1493_s27, 0  ;;  %s936_s4 = sshll.u32 %s1389_s15, 11 }
  0x1d   : > { %s1504_s7 = scalar_lea.hbm %s1772_s0, %s936_s4  ;;  %s151_s8 = sshll.u32 %s138_s30, 4  ;;  %s1506_s8 = int_to_ptr.vmem [resolvable:$true] %s151_s8 }
  0x1e   : > { %s1295_s9 = scalar_lea.hbm %s1504_s7, %s1493_s27  ;;  %s1299_s12 = scalar_lea.hbm %s1772_s0, 4224 }
  0x1f   : > { %p1296_p12 = scmp.ne.s32.totalorder %s1504_s7, %s1295_s9  ;;  %p1300_p1 = scmp.lt.u32.totalorder %s1504_s7, %s1772_s0 }
  0x20   : > { %p1301_p2 = scmp.lt.u32.totalorder %s1299_s12, %s1295_s9  ;;  %p1303_p4 = scmp.lt.u32.totalorder %s1295_s9, %s1504_s7 }
  0x21   : > { %p1297_p13 = pnand %p1296_p12, %p911_p11 }
  0x22   : > { %p1302_p3 = por %p1301_p2, %p1300_p1 }
  0x23   : > { %p1298_p0 = pneg %p1297_p13 }
  0x24   : > { %p1304_p5 = por %p1303_p4, %p1302_p3 }
  0x26   : > { %p1305_p6 = pnand %p1304_p5, %p1298_p0 }
  0x28   : > { %1308 = shalt.err (!%p1305_p6)
}
  0x29   : > { %s1309_s23 = scalar_lea.vmem %s1506_s8, %s1493_s27  ;;  %s1423_s24 = smov [#allocation2]  }
  0x2a   : > { %p1310_p9 = scmp.ne.s32.totalorder %s1506_s8, %s1309_s23  ;;  %s1313_s25 = sshll.u32 %s1423_s24, 4  ;;  %s1314_s25 = int_to_ptr.vmem [resolvable:$false] %s1313_s25 }
  0x2b   : > { %s1315_s26 = scalar_lea.vmem %s1314_s25, 4096  ;;  %p1316_p13 = scmp.lt.s32.totalorder %s1506_s8, %s1314_s25 }
  0x2c   : > { %p1311_p10 = pnand %p1310_p9, %p911_p11  ;;  %p1317_p1 = scmp.lt.s32.totalorder %s1315_s26, %s1309_s23 }
  0x2e   : > { %p1312_p12 = pneg %p1311_p10  ;;  %p1318_p2 = por %p1317_p1, %p1316_p13 }
  0x30   : > { %p1319_p3 = pnand %p1318_p2, %p1312_p12 }
  0x32   : > { %1322 = shalt.err (!%p1319_p3)
}
  0x33   : > { %s1424_s28 = smov 128   ;;  %s1425_s30 = smov 8  }
  0x34   : > { %157 = dma.hbm_to_vmem [thread:$0]  (%p911_p11), %s1504_s7, %s1493_s27, %s1506_s8, %s1496_s29, %s1424_s28, %s1424_s28, %s1425_s30  }
  0x35 PF: > { %p915_p0 = scmp.ge.s32.totalorder %s1389_s15, 1  ;;  %p159_p4 = scmp.lt.s32.totalorder %s1389_s15, 4 }
  0x37   : > { %p160_p5 = pnand %p915_p0, %p159_p4 }
  0x38   : > { %s165_s4 = sand.u32 (!%p160_p5), 1, %s1381_s13  }
  0x39   : > { %163 = sbr.rel (%p160_p5) target bundleno = 395 (0x18b), region = 32  ;;  %s1536_s5 = sshll.u32 (!%p160_p5), %s165_s4, 7 }
  0x3a   : > { %s166_s6 = scalar_lea.sflag (!%p160_p5), [#allocation3], %s165_s4  ;;  %s1539_s9 = scalar_lea.vmem (!%p160_p5), [#allocation2], %s1536_s5 }
  0x40   : > { %1372 = dma.done.wait (%p1482_p7), %s166_s6, 2048  }
  0x41   : > { %1374 = vsyncadd (%p1482_p7), %s166_s6, 4294965248  ;;  %v273_v0 = vld [vmem:[%s1773_s1] sm:$0xff]  ;;  %v274_v1 = vld [vmem:[%s1773_s1 + $0x8] sm:$0xff]  ;;  %vm602_vm0 = vcmask 31744   ;;  %s1621_s26 = scalar_lea.vmem [#allocation4], %s1536_s5   ;;  %s920_s5 = sshll.u32 (%p1486_p8), %s1465_s16, 4 }
  0x42   : > { %v275_v2 = vld [vmem:[%s1773_s1 + $0x10] sm:$0xff]  ;;  %v1116_v3 = vpack.c.bf16 %v274_v1, %v273_v0  ;;  %v276_v4 = vld [vmem:[%s1773_s1 + $0x18] sm:$0xff]  ;;  %v277_v6 = vld [vmem:[%s1773_s1 + $0x20] sm:$0xff]  ;;  %s937_s28 = sshll.u32 (%p1486_p8), %s1465_s16, 7  ;;  %s627_s30 = ssub.s32 (%p1486_p8), 33, %s920_s5 }
  0x43   : > { %v1120_v5 = vpack.c.bf16 %v276_v4, %v275_v2  ;;  %v278_v7 = vld [vmem:[%s1773_s1 + $0x28] sm:$0xff]  ;;  %v201_v9 = vld [vmem:[%s1539_s9] sm:$0xff]  ;;  %v279_v11 = vld [vmem:[%s1773_s1 + $0x30] sm:$0xff]  ;;  %s1676_s27 = scalar_lea.vmem (%p1486_p8), %s1775_s3, %s937_s28   ;;  %p628_p7 = scmp.lt.s32.totalorder (%p1486_p8), %s627_s30, 16 }
  0x44   : > { %1117 = vmatprep.subr.bf16.mxu1 %v1116_v3  ;;  %1149 = vmatprep.subr.bf16.mxu0 %v1116_v3  ;;  %v1124_v8 = vpack.c.bf16 %v278_v7, %v277_v6  ;;  %v202_v10 = vld [vmem:[%s1539_s9 + $0x8] sm:$0xff]  ;;  %v280_v12 = vld [vmem:[%s1773_s1 + $0x38] sm:$0xff]  ;;  %v217_v13 = vmul.f32 %v201_v9, %v201_v9  ;;  %v281_v17 = vld [vmem:[%s1773_s1 + $0x40] sm:$0xff] }
  0x45   : > { %1119 = vmatpush3.bf16.msra.mxu1 %v1116_v3  ;;  %1151 = vmatpush3.bf16.msra.mxu0 %v1116_v3  ;;  %v218_v14 = vmul.f32 %v202_v10, %v202_v10  ;;  %v1128_v16 = vpack.c.bf16 %v280_v12, %v279_v11  ;;  %v282_v18 = vld [vmem:[%s1773_s1 + $0x48] sm:$0xff]  ;;  %v283_v22 = vld [vmem:[%s1773_s1 + $0x50] sm:$0xff]  ;;  %v284_v23 = vld [vmem:[%s1773_s1 + $0x58] sm:$0xff] }
  0x46   : > { %1121 = vmatprep.subr.bf16.mxu1 %v1120_v5  ;;  %1153 = vmatprep.subr.bf16.mxu0 %v1120_v5  ;;  %v1132_v21 = vpack.c.bf16 %v282_v18, %v281_v17  ;;  %v1136_v24 = vpack.c.bf16 %v284_v23, %v283_v22  ;;  %v203_v25 = vld [vmem:[%s1539_s9 + $0x10] sm:$0xff]  ;;  %v204_v26 = vld [vmem:[%s1539_s9 + $0x18] sm:$0xff]  ;;  %v285_v27 = vld [vmem:[%s1773_s1 + $0x60] sm:$0xff] }
  0x47   : > { %v1571_v15 = vpack.c.bf16 %v218_v14, %v217_v13  ;;  %v286_v28 = vld [vmem:[%s1773_s1 + $0x68] sm:$0xff]  ;;  %v219_v29 = vmul.f32 %v203_v25, %v203_v25  ;;  %v220_v30 = vmul.f32 %v204_v26, %v204_v26  ;;  %v205_v32 = vld [vmem:[%s1539_s9 + $0x20] sm:$0xff]  ;;  %v287_v34 = vld [vmem:[%s1773_s1 + $0x70] sm:$0xff] }
  0x48   : > { %v1140_v31 = vpack.c.bf16 %v286_v28, %v285_v27  ;;  %v206_v33 = vld [vmem:[%s1539_s9 + $0x28] sm:$0xff]  ;;  %v288_v35 = vld [vmem:[%s1773_s1 + $0x78] sm:$0xff]  ;;  %v221_v37 = vmul.f32 %v205_v32, %v205_v32  ;;  %v207_v39 = vld [vmem:[%s1539_s9 + $0x30] sm:$0xff] }
  0x49   : > { %1123 = vmatpush3.bf16.msra.mxu1 %v1120_v5  ;;  %1155 = vmatpush3.bf16.msra.mxu0 %v1120_v5  ;;  %v241_v19 = vunpack.c.l.bf16 %v1571_v15  ;;  %v234_v36 = vpack.c.bf16 %v220_v30, %v219_v29  ;;  %v222_v38 = vmul.f32 %v206_v33, %v206_v33  ;;  %v208_v40 = vld [vmem:[%s1539_s9 + $0x38] sm:$0xff]  ;;  %v1144_v41 = vpack.c.bf16 %v288_v35, %v287_v34  ;;  %v209_v47 = vld [vmem:[%s1539_s9 + $0x40] sm:$0xff]  ;;  %v210_v48 = vld [vmem:[%s1539_s9 + $0x48] sm:$0xff] }
  0x4a   : > { %1125 = vmatprep.subr.bf16.mxu1 %v1124_v8  ;;  %1157 = vmatprep.subr.bf16.mxu0 %v1124_v8  ;;  %v242_v42 = vunpack.c.h.bf16 %v1571_v15  ;;  %v223_v43 = vmul.f32 %v207_v39, %v207_v39  ;;  %v224_v44 = vmul.f32 %v208_v40, %v208_v40  ;;  %v225_v54 = vmul.f32 %v209_v47, %v209_v47  ;;  %v211_v56 = vld [vmem:[%s1539_s9 + $0x50] sm:$0xff]  ;;  %v212_v57 = vld [vmem:[%s1539_s9 + $0x58] sm:$0xff]  ;;  %v213_v1 = vld [vmem:[%s1539_s9 + $0x60] sm:$0xff] }
  0x4b   : > { %v257_v20 = vsub.f32 %v217_v13, %v241_v19  ;;  %1092 = vmatprep.mubr.f32.mxu0 %v241_v19  ;;  %v243_v45 = vunpack.c.l.bf16 %v234_v36  ;;  %v235_v46 = vpack.c.bf16 %v222_v38, %v221_v37  ;;  %v244_v50 = vunpack.c.h.bf16 %v234_v36  ;;  %v214_v2 = vld [vmem:[%s1539_s9 + $0x68] sm:$0xff]  ;;  %v215_v10 = vld [vmem:[%s1539_s9 + $0x70] sm:$0xff]  ;;  %v216_v11 = vld [vmem:[%s1539_s9 + $0x78] sm:$0xff] }
  0x4c   : > { %v258_v49 = vsub.f32 %v218_v14, %v242_v42  ;;  %v236_v51 = vpack.c.bf16 %v224_v44, %v223_v43  ;;  %v226_v55 = vmul.f32 %v210_v48, %v210_v48  ;;  %v227_v61 = vmul.f32 %v211_v56, %v211_v56  ;;  %v1616_v34 = vld [vmem:[%s1774_s2] ss:$0 sm:$0xff] }
  0x4d   : > { %1127 = vmatpush3.bf16.msra.mxu1 %v1124_v8  ;;  %1159 = vmatpush3.bf16.msra.mxu0 %v1124_v8  ;;  %v259_v52 = vsub.f32 %v219_v29, %v243_v45  ;;  %v245_v53 = vunpack.c.l.bf16 %v235_v46  ;;  %v260_v58 = vsub.f32 %v220_v30, %v244_v50  ;;  %v246_v59 = vunpack.c.h.bf16 %v235_v46 }
  0x4e   : > { %1129 = vmatprep.subr.bf16.mxu1 %v1128_v16  ;;  %1161 = vmatprep.subr.bf16.mxu0 %v1128_v16  ;;  %v247_v60 = vunpack.c.l.bf16 %v236_v51  ;;  %v237_v63 = vpack.c.bf16 %v226_v55, %v225_v54  ;;  %v228_v0 = vmul.f32 %v212_v57, %v212_v57  ;;  %v248_v5 = vunpack.c.h.bf16 %v236_v51 }
  0x4f   : > { %1036 = vmatprep.mubr.f32.mxu1 %v257_v20  ;;  %v261_v62 = vsub.f32 %v221_v37, %v245_v53  ;;  %v262_v3 = vsub.f32 %v222_v38, %v246_v59  ;;  %v229_v8 = vmul.f32 %v213_v1, %v213_v1  ;;  %v230_v9 = vmul.f32 %v214_v2, %v214_v2 }
  0x50   : > { %v263_v4 = vsub.f32 %v223_v43, %v247_v60  ;;  %v249_v6 = vunpack.c.l.bf16 %v237_v63  ;;  %v238_v7 = vpack.c.bf16 %v228_v0, %v227_v61  ;;  %v264_v12 = vsub.f32 %v224_v44, %v248_v5 }
  0x51   : > { %1131 = vmatpush3.bf16.msra.mxu1 %v1128_v16  ;;  %1163 = vmatpush3.bf16.msra.mxu0 %v1128_v16  ;;  %v250_v13 = vunpack.c.h.bf16 %v237_v63  ;;  %v231_v14 = vmul.f32 %v215_v10, %v215_v10  ;;  %v239_v17 = vpack.c.bf16 %v230_v9, %v229_v8  ;;  %v232_v18 = vmul.f32 %v216_v11, %v216_v11 }
  0x52   : > { %1133 = vmatprep.subr.bf16.mxu1 %v1132_v21  ;;  %1165 = vmatprep.subr.bf16.mxu0 %v1132_v21  ;;  %v265_v15 = vsub.f32 %v225_v54, %v249_v6  ;;  %v251_v16 = vunpack.c.l.bf16 %v238_v7  ;;  %v252_v20 = vunpack.c.h.bf16 %v238_v7 }
  0x53   : > { %v266_v19 = vsub.f32 %v226_v55, %v250_v13  ;;  %v253_v22 = vunpack.c.l.bf16 %v239_v17  ;;  %v240_v23 = vpack.c.bf16 %v232_v18, %v231_v14  ;;  %v254_v25 = vunpack.c.h.bf16 %v239_v17 }
  0x55   : > { %1135 = vmatpush3.bf16.msra.mxu1 %v1132_v21  ;;  %1167 = vmatpush3.bf16.msra.mxu0 %v1132_v21  ;;  %v267_v21 = vsub.f32 %v227_v61, %v251_v16  ;;  %v269_v26 = vsub.f32 %v229_v8, %v253_v22  ;;  %v255_v27 = vunpack.c.l.bf16 %v240_v23  ;;  %v270_v28 = vsub.f32 %v230_v9, %v254_v25 }
  0x56   : > { %1137 = vmatprep.subr.bf16.mxu1 %v1136_v24  ;;  %1169 = vmatprep.subr.bf16.mxu0 %v1136_v24  ;;  %v256_v29 = vunpack.c.h.bf16 %v240_v23 }
  0x57   : > { %v271_v30 = vsub.f32 %v231_v14, %v255_v27 }
  0x59   : > { %1139 = vmatpush3.bf16.msra.mxu1 %v1136_v24  ;;  %1171 = vmatpush3.bf16.msra.mxu0 %v1136_v24  ;;  %v268_v24 = vsub.f32 %v228_v0, %v252_v20 }
  0x5a   : > { %1141 = vmatprep.subr.bf16.mxu1 %v1140_v31  ;;  %1173 = vmatprep.subr.bf16.mxu0 %v1140_v31 }
  0x5d   : > { %1143 = vmatpush3.bf16.msra.mxu1 %v1140_v31  ;;  %1175 = vmatpush3.bf16.msra.mxu0 %v1140_v31  ;;  %v272_v31 = vsub.f32 %v232_v18, %v256_v29 }
  0x5e   : > { %1145 = vmatprep.subr.bf16.mxu1 %v1144_v41  ;;  %1177 = vmatprep.subr.bf16.mxu0 %v1144_v41 }
  0x61   : > { %1147 = vmatpush3.bf16.msra.mxu1 %v1144_v41  ;;  %1179 = vmatpush3.bf16.msra.mxu0 %v1144_v41 }
  0x64   : > { %1037 = vmatmul.mubr.f32.vlgmr.msra.gmra.mrb[0].mxu1 %v258_v49  ;;  %1093 = vmatmul.mubr.f32.vlgmr.msra.gmra.mrb[0].mxu0 %v242_v42 }
  0x65   : > { %1039 = vmatprep.mubr.f32.mxu1 %v259_v52  ;;  %1095 = vmatprep.mubr.f32.mxu0 %v243_v45 }
  0x68   : > { %1040 = vmatmul.mubr.f32.gmra.mrb[2].mxu1 %v260_v58  ;;  %1096 = vmatmul.mubr.f32.gmra.mrb[2].mxu0 %v244_v50 }
  0x69   : > { %1042 = vmatprep.mubr.f32.mxu1 %v261_v62  ;;  %1098 = vmatprep.mubr.f32.mxu0 %v245_v53 }
  0x6c   : > { %1043 = vmatmul.mubr.f32.gmra.mrb[4].mxu1 %v262_v3  ;;  %1099 = vmatmul.mubr.f32.gmra.mrb[4].mxu0 %v246_v59 }
  0x6d   : > { %1045 = vmatprep.mubr.f32.mxu1 %v263_v4  ;;  %1101 = vmatprep.mubr.f32.mxu0 %v247_v60 }
  0x70   : > { %1046 = vmatmul.mubr.f32.gmra.mrb[6].mxu1 %v264_v12  ;;  %1102 = vmatmul.mubr.f32.gmra.mrb[6].mxu0 %v248_v5 }
  0x71   : > { %1048 = vmatprep.mubr.f32.mxu1 %v265_v15  ;;  %1104 = vmatprep.mubr.f32.mxu0 %v249_v6 }
  0x74   : > { %1049 = vmatmul.mubr.f32.gmra.mrb[8].mxu1 %v266_v19  ;;  %1105 = vmatmul.mubr.f32.gmra.mrb[8].mxu0 %v250_v13 }
  0x75   : > { %1051 = vmatprep.mubr.f32.mxu1 %v267_v21  ;;  %1107 = vmatprep.mubr.f32.mxu0 %v251_v16 }
  0x78   : > { %1052 = vmatmul.mubr.f32.gmra.mrb[10].mxu1 %v268_v24  ;;  %1108 = vmatmul.mubr.f32.gmra.mrb[10].mxu0 %v252_v20 }
  0x79   : > { %1054 = vmatprep.mubr.f32.mxu1 %v269_v26  ;;  %1110 = vmatprep.mubr.f32.mxu0 %v253_v22 }
  0x7c   : > { %1055 = vmatmul.mubr.f32.gmra.mrb[12].mxu1 %v270_v28  ;;  %1111 = vmatmul.mubr.f32.gmra.mrb[12].mxu0 %v254_v25 }
  0x7d   : > { %1057 = vmatprep.mubr.f32.mxu1 %v271_v30  ;;  %1113 = vmatprep.mubr.f32.mxu0 %v255_v27 }
  0x80   : > { %1058 = vmatmul.mubr.f32.gmra.mrb[14].mxu1 %v272_v31  ;;  %1114 = vmatmul.mubr.f32.gmra.mrb[14].mxu0 %v256_v29 }
 0x137   : > { %v1038_v32 = vpop.f32.mrb[0].mxu1  ;;  %v1094_v33 = vpop.f32.mrb[0].mxu0 }
 0x138   : > { %v506_v35 = vadd.f32 %v1094_v33, %v1038_v32  ;;  %v355_v36 = vpop.f32.mrb[1].mxu1  ;;  %v500_v37 = vpop.f32.mrb[1].mxu0 }
 0x139   : > { %v501_v38 = vadd.f32 %v500_v37, %v355_v36 }
 0x13a   : > { %v587_v39 = vmul.f32 %v1616_v34, %v506_v35 }
 0x13b   : > { %v586_v40 = vmul.f32 %v1616_v34, %v501_v38  ;;  %v1041_v41 = vpop.f32.mrb[2].mxu1  ;;  %v1097_v42 = vpop.f32.mrb[2].mxu0 }
 0x13c   : > { %604 = vst.msk [vmem:[%s1621_s26 + $0x8] sm:$0xff] %vm602_vm0, %v587_v39  ;;  %v516_v43 = vadd.f32 %v1097_v42, %v1041_v41  ;;  %v365_v44 = vpop.f32.mrb[3].mxu1  ;;  %v510_v45 = vpop.f32.mrb[3].mxu0 }
 0x13d   : > { %603 = vst.msk [vmem:[%s1621_s26] sm:$0xff] %vm602_vm0, %v586_v40  ;;  %v511_v46 = vadd.f32 %v510_v45, %v365_v44 }
 0x13e   : > { %v589_v47 = vmul.f32 %v1616_v34, %v516_v43 }
 0x13f   : > { %v588_v48 = vmul.f32 %v1616_v34, %v511_v46  ;;  %v1044_v49 = vpop.f32.mrb[4].mxu1  ;;  %v1100_v50 = vpop.f32.mrb[4].mxu0 }
 0x140   : > { %606 = vst.msk [vmem:[%s1621_s26 + $0x18] sm:$0xff] %vm602_vm0, %v589_v47  ;;  %v526_v51 = vadd.f32 %v1100_v50, %v1044_v49  ;;  %v375_v52 = vpop.f32.mrb[5].mxu1  ;;  %v520_v53 = vpop.f32.mrb[5].mxu0 }
 0x141   : > { %605 = vst.msk [vmem:[%s1621_s26 + $0x10] sm:$0xff] %vm602_vm0, %v588_v48  ;;  %v521_v54 = vadd.f32 %v520_v53, %v375_v52 }
 0x142   : > { %v591_v55 = vmul.f32 %v1616_v34, %v526_v51 }
 0x143   : > { %v590_v56 = vmul.f32 %v1616_v34, %v521_v54  ;;  %v1047_v57 = vpop.f32.mrb[6].mxu1  ;;  %v1103_v58 = vpop.f32.mrb[6].mxu0 }
 0x144   : > { %608 = vst.msk [vmem:[%s1621_s26 + $0x28] sm:$0xff] %vm602_vm0, %v591_v55  ;;  %v536_v59 = vadd.f32 %v1103_v58, %v1047_v57  ;;  %v385_v60 = vpop.f32.mrb[7].mxu1  ;;  %v530_v61 = vpop.f32.mrb[7].mxu0 }
 0x145   : > { %607 = vst.msk [vmem:[%s1621_s26 + $0x20] sm:$0xff] %vm602_vm0, %v590_v56  ;;  %v531_v62 = vadd.f32 %v530_v61, %v385_v60 }
 0x146   : > { %v593_v63 = vmul.f32 %v1616_v34, %v536_v59 }
 0x147   : > { %v592_v0 = vmul.f32 %v1616_v34, %v531_v62  ;;  %v1050_v1 = vpop.f32.mrb[8].mxu1  ;;  %v1106_v2 = vpop.f32.mrb[8].mxu0 }
 0x148   : > { %610 = vst.msk [vmem:[%s1621_s26 + $0x38] sm:$0xff] %vm602_vm0, %v593_v63  ;;  %v546_v3 = vadd.f32 %v1106_v2, %v1050_v1  ;;  %v395_v4 = vpop.f32.mrb[9].mxu1  ;;  %v540_v5 = vpop.f32.mrb[9].mxu0 }
 0x149   : > { %609 = vst.msk [vmem:[%s1621_s26 + $0x30] sm:$0xff] %vm602_vm0, %v592_v0  ;;  %v541_v6 = vadd.f32 %v540_v5, %v395_v4 }
 0x14a   : > { %v595_v7 = vmul.f32 %v1616_v34, %v546_v3 }
 0x14b   : > { %v594_v8 = vmul.f32 %v1616_v34, %v541_v6  ;;  %v1053_v9 = vpop.f32.mrb[10].mxu1  ;;  %v1109_v10 = vpop.f32.mrb[10].mxu0 }
 0x14c   : > { %612 = vst.msk [vmem:[%s1621_s26 + $0x48] sm:$0xff] %vm602_vm0, %v595_v7  ;;  %v556_v11 = vadd.f32 %v1109_v10, %v1053_v9  ;;  %v405_v12 = vpop.f32.mrb[11].mxu1  ;;  %v550_v13 = vpop.f32.mrb[11].mxu0 }
 0x14d   : > { %611 = vst.msk [vmem:[%s1621_s26 + $0x40] sm:$0xff] %vm602_vm0, %v594_v8  ;;  %v551_v14 = vadd.f32 %v550_v13, %v405_v12 }
 0x14e   : > { %v597_v15 = vmul.f32 %v1616_v34, %v556_v11 }
 0x14f   : > { %v596_v16 = vmul.f32 %v1616_v34, %v551_v14  ;;  %v1056_v17 = vpop.f32.mrb[12].mxu1  ;;  %v1112_v18 = vpop.f32.mrb[12].mxu0 }
 0x150   : > { %614 = vst.msk [vmem:[%s1621_s26 + $0x58] sm:$0xff] %vm602_vm0, %v597_v15  ;;  %v566_v19 = vadd.f32 %v1112_v18, %v1056_v17  ;;  %v415_v20 = vpop.f32.mrb[13].mxu1  ;;  %v560_v21 = vpop.f32.mrb[13].mxu0 }
 0x151   : > { %613 = vst.msk [vmem:[%s1621_s26 + $0x50] sm:$0xff] %vm602_vm0, %v596_v16  ;;  %v561_v22 = vadd.f32 %v560_v21, %v415_v20 }
 0x152   : > { %v599_v23 = vmul.f32 %v1616_v34, %v566_v19 }
 0x153   : > { %v598_v24 = vmul.f32 %v1616_v34, %v561_v22  ;;  %v1059_v25 = vpop.f32.mrb[14].mxu1  ;;  %v1115_v26 = vpop.f32.mrb[14].mxu0  ;;  %625 = sbr.rel (!%p1486_p8) target bundleno = 395 (0x18b), region = 40 }
 0x154   : > { %616 = vst.msk [vmem:[%s1621_s26 + $0x68] sm:$0xff] %vm602_vm0, %v599_v23  ;;  %v576_v27 = vadd.f32 %v1115_v26, %v1059_v25  ;;  %v425_v28 = vpop.f32.mrb[15].mxu1  ;;  %v570_v29 = vpop.f32.mrb[15].mxu0 }
 0x155   : > { %615 = vst.msk [vmem:[%s1621_s26 + $0x60] sm:$0xff] %vm602_vm0, %v598_v24  ;;  %v571_v30 = vadd.f32 %v570_v29, %v425_v28 }
 0x156   : > { %v601_v31 = vmul.f32 %v1616_v34, %v576_v27 }
 0x157   : > { %v600_v32 = vmul.f32 %v1616_v34, %v571_v30 }
 0x158   : > { %618 = vst.msk [vmem:[%s1621_s26 + $0x78] sm:$0xff] %vm602_vm0, %v601_v31 }
 0x159   : > { %617 = vst.msk [vmem:[%s1621_s26 + $0x70] sm:$0xff] %vm602_vm0, %v600_v32 }
 0x15a   : > { %s1788_s30 = smov (!%p628_p7, %s627_s30), 16 }
 0x15b   : > { %s921_s29 = sshll.u32 %s1788_s30, 7 }
 0x15c   : > { %p924_p11 = scmp.eq.s32.totalorder %s921_s29, 0 }
 0x15d   : > { %s1682_s22 = sshrl.u32 (!%p924_p11), %s1788_s30, 4 }
 0x15e   : > { %636 = sbr.rel (%p924_p11) target bundleno = 395 (0x18b), region = 44  ;;  %p925_p8 = scmp.le.s32.totalorder (!%p924_p11), %s1682_s22, 0 }
 0x165   : > { %858 = sbr.rel (%p925_p8) target bundleno = 374 (0x176), region = 126  ;;  %s1778_s16 = smov (!%p925_p8), %s1676_s27 }
 0x166   : > { %s1779_s15 = smov (!%p925_p8), %s1621_s26  ;;  %s1691_s7 = smov (!%p925_p8), 0  }
 0x167   : > { %s1693_s8 = smov (!%p925_p8), 0  }
 0x16c LB: >> { %v728_v33 = vld [vmem:[%s1397_s15] sm:$0xff]  ;;  %v730_v34 = vld [vmem:[%s1397_s15 + $0x8] sm:$0xff]  ;;  %v732_v35 = vld [vmem:[%s1397_s15 + $0x10] sm:$0xff]  ;;  %s760_s10 = sadd.s32 1, %s1401_s7  ;;  %s722_s8 = sadd.s32 1, %s1405_s8   ;;  %s1405_s8 = sphi %s1693_s8, %s722_s8   ;;  %s1401_s7 = sphi %s1691_s7, %s1780_s7   ;;  %s1397_s15 = sphi %s1779_s15, %s765_s15   ;;  %s1393_s16 = sphi %s1778_s16, %s766_s16  }
 0x16d   : >> { %729 = vst [vmem:[%s1393_s16] sm:$0xff] %v728_v33  ;;  %731 = vst [vmem:[%s1393_s16 + $0x8] sm:$0xff] %v730_v34  ;;  %v734_v36 = vld [vmem:[%s1397_s15 + $0x18] sm:$0xff]  ;;  %v736_v37 = vld [vmem:[%s1397_s15 + $0x20] sm:$0xff]  ;;  %p761_p6 = scmp.ge.s32.totalorder %s760_s10, %s1682_s22  ;;  %p721_p9 = scmp.ge.s32.totalorder %s722_s8, %s1682_s22 }
 0x16e   : >> { %733 = vst [vmem:[%s1393_s16 + $0x10] sm:$0xff] %v732_v35  ;;  %v738_v38 = vld [vmem:[%s1397_s15 + $0x28] sm:$0xff]  ;;  %735 = vst [vmem:[%s1393_s16 + $0x18] sm:$0xff] %v734_v36  ;;  %v740_v39 = vld [vmem:[%s1397_s15 + $0x30] sm:$0xff] }
 0x16f   : >> { %737 = vst [vmem:[%s1393_s16 + $0x20] sm:$0xff] %v736_v37  ;;  %739 = vst [vmem:[%s1393_s16 + $0x28] sm:$0xff] %v738_v38  ;;  %v742_v40 = vld [vmem:[%s1397_s15 + $0x38] sm:$0xff]  ;;  %v744_v41 = vld [vmem:[%s1397_s15 + $0x40] sm:$0xff]  ;;  %s1790_s10 = smov (%p761_p6, %s760_s10), 0  ;;  %724 = sbr.rel (!%p721_p9) target bundleno = 364 (0x16c), region = 132 }
 0x170   : >> { %741 = vst [vmem:[%s1393_s16 + $0x30] sm:$0xff] %v740_v39  ;;  %743 = vst [vmem:[%s1393_s16 + $0x38] sm:$0xff] %v742_v40  ;;  %v746_v42 = vld [vmem:[%s1397_s15 + $0x48] sm:$0xff]  ;;  %v748_v43 = vld [vmem:[%s1397_s15 + $0x50] sm:$0xff]  ;;  %s926_s11 = sshll.u32 %s1790_s10, 7  ;;  %s1780_s7 = smov %s1790_s10 }
 0x171   : >> { %745 = vst [vmem:[%s1393_s16 + $0x40] sm:$0xff] %v744_v41  ;;  %v750_v44 = vld [vmem:[%s1397_s15 + $0x58] sm:$0xff]  ;;  %747 = vst [vmem:[%s1393_s16 + $0x48] sm:$0xff] %v746_v42  ;;  %v752_v45 = vld [vmem:[%s1397_s15 + $0x60] sm:$0xff] }
 0x172   : >> { %749 = vst [vmem:[%s1393_s16 + $0x50] sm:$0xff] %v748_v43  ;;  %751 = vst [vmem:[%s1393_s16 + $0x58] sm:$0xff] %v750_v44  ;;  %v754_v46 = vld [vmem:[%s1397_s15 + $0x68] sm:$0xff]  ;;  %v756_v47 = vld [vmem:[%s1397_s15 + $0x70] sm:$0xff] }
 0x173   : >> { %753 = vst [vmem:[%s1393_s16 + $0x60] sm:$0xff] %v752_v45  ;;  %755 = vst [vmem:[%s1393_s16 + $0x68] sm:$0xff] %v754_v46  ;;  %v758_v48 = vld [vmem:[%s1397_s15 + $0x78] sm:$0xff]  ;;  %s765_s15 = scalar_lea.vmem %s1621_s26, %s926_s11 [#allocation4]  }
 0x174   : >> { %757 = vst [vmem:[%s1393_s16 + $0x70] sm:$0xff] %v756_v47  ;;  %759 = vst [vmem:[%s1393_s16 + $0x78] sm:$0xff] %v758_v48  ;;  %s766_s16 = scalar_lea.vmem %s1676_s27, %s926_s11  }
 0x176 PF: > { %s1751_s12 = sand.u32 15, %s1788_s30   ;;  %s938_s21 = sshll.u32 %s1682_s22, 7 }
 0x177   : > { %s771_s18 = scalar_lea.vmem %s1621_s26, %s938_s21 [#allocation4]   ;;  %s773_s19 = scalar_lea.vmem %s1676_s27, %s938_s21  }
 0x178   : > { %p931_p10 = scmp.le.s32.totalorder %s1751_s12, 0 }
 0x179   : > { %s1407_s23 = smov (!%p931_p10), %s773_s19   ;;  %s1411_s24 = smov (!%p931_p10), %s771_s18  }
 0x17a   : > { %872 = sbr.rel (%p931_p10) target bundleno = 395 (0x18b), region = 137  ;;  %s1415_s9 = smov (!%p931_p10), 0  }
 0x17b   : > { %s1419_s25 = smov (!%p931_p10), 0  }
 0x181 LB: >> { %v783_v49 = vld [vmem:[%s1413_s24] sm:$0xff]  ;;  %s785_s5 = sadd.s32 1, %s1417_s9  ;;  %s777_s25 = sadd.s32 1, %s1421_s25   ;;  %s1421_s25 = sphi %s1419_s25, %s777_s25   ;;  %s1417_s9 = sphi %s1415_s9, %s1416_s9   ;;  %s1413_s24 = sphi %s1411_s24, %s790_s24   ;;  %s1409_s23 = sphi %s1407_s23, %s791_s23  }
 0x182   : >> { %784 = vst [vmem:[%s1409_s23] sm:$0xff] %v783_v49  ;;  %p786_p12 = scmp.ge.s32.totalorder %s785_s5, %s1751_s12  ;;  %p776_p13 = scmp.ge.s32.totalorder %s777_s25, %s1751_s12 }
 0x184   : >> { %s1792_s5 = smov (%p786_p12, %s785_s5), 0  ;;  %779 = sbr.rel (!%p776_p13) target bundleno = 385 (0x181), region = 143 }
 0x185   : >> { %s932_s26 = sshll.u32 %s1792_s5, 3  ;;  %s1416_s9 = smov %s1792_s5  }
 0x186   : >> { %s790_s24 = scalar_lea.vmem %s771_s18, %s932_s26 [#allocation4]   ;;  %s791_s23 = scalar_lea.vmem %s773_s19, %s932_s26  }
 0x18b PF: > { %p13_p1 = scmp.ge.s32.totalorder %s1468_s17, 5   ;;  %s1781_s12 = smov %s1381_s13 }
 0x18c   : > { %s1782_s13 = smov %s1385_s14  ;;  %s1783_s14 = smov %s1478_s20 }
 0x18d   : > { %s1784_s15 = smov %s1468_s17  ;;  %15 = sbr.rel (!%p13_p1) target bundleno = 3 (0x3), region = 154 }
 0x194   :  { %807 = vsyncpa [#allocation3], 1 }
 0x195   :  { %809 = vsyncpa [#allocation3 + $0x1], 1 }

</bundles_post_ra>
